<compile_context>
chip_gen: v5e
topology: v5e:2x2
jax: 0.10.0
libtpu: 0.0.40
codegen_flags: <defaults>
</compile_context>

<pallas_src>
import jax
import jax.numpy as jnp
from jax import lax
from jax.experimental import pallas as pl
from jax.experimental.pallas import tpu as pltpu


def _round_up(x: int, m: int) -> int:
    return (x + m - 1) // m * m


def _pick_tile(padded: int, granule: int, target: int) -> int:
    """Largest multiple of `granule` that divides `padded` and is <= target."""
    n = padded // granule
    dmax = max(1, min(n, target // granule))
    for d in range(dmax, 0, -1):
        if n % d == 0:
            return d * granule
    return granule


_CONTRACT_LAST = (((1,), (1,)), ((), ()))  # x:(m,k) . w:(n,k) -> (m,n)


def _fused_single_step_kernel(x_ref, w_ref, b_ref, other_ref, o_ref):
    """One shot: y = relu(x @ w.T + b + other).  No accumulator, single store."""
    acc = lax.dot_general(
        x_ref[...], w_ref[...],
        dimension_numbers=_CONTRACT_LAST,
        preferred_element_type=jnp.float32,
    )
    v = acc + b_ref[...] + other_ref[...]
    o_ref[...] = jnp.maximum(v, 0.0).astype(o_ref.dtype)


def _fused_multi_k_kernel(x_ref, w_ref, b_ref, other_ref, o_ref, acc_ref):
    """K-tiled variant with f32 VMEM accumulator and fused epilogue."""
    k = pl.program_id(2)

    @pl.when(k == 0)
    def _init():
        acc_ref[...] = jnp.zeros_like(acc_ref)

    acc_ref[...] += lax.dot_general(
        x_ref[...], w_ref[...],
        dimension_numbers=_CONTRACT_LAST,
        preferred_element_type=jnp.float32,
    )

    @pl.when(k == pl.num_programs(2) - 1)
    def _finalize():
        v = acc_ref[...] + b_ref[...] + other_ref[...]
        o_ref[...] = jnp.maximum(v, 0.0).astype(o_ref.dtype)


def linear_add_relu(x, w, b, other, *, tm=512, tn=512, tk=512, compute_dtype=None):
    """y = relu(x @ w.T + b + other).

    x:     (M, K)  float32
    w:     (N, K)  float32   (PyTorch nn.Linear weight layout)
    b:     (N,)    float32
    other: (M, N)  float32
    compute_dtype: optionally cast x/w (e.g. jnp.bfloat16) for bf16 MXU inputs;
                   accumulation and epilogue stay f32.
    """
    M, K = x.shape
    N, Kw = w.shape
    assert K == Kw and b.shape == (N,) and other.shape == (M, N)

    out_dtype = x.dtype
    b2 = b.reshape(1, N)  # free metadata reshape, broadcasts over rows

    if compute_dtype is not None:
        x_c = x.astype(compute_dtype)
        w_c = w.astype(compute_dtype)
    else:
        x_c, w_c = x, w
    in_itemsize = jnp.dtype(x_c.dtype).itemsize
    out_itemsize = jnp.dtype(out_dtype).itemsize

    # ---------------- Tiny-problem fast path ----------------
    # Whole problem as full-array VMEM refs: full-dim blocks bypass the (8,128)
    # divisibility rule, so there is no padding, no slicing and no accumulator.
    if M <= 256 and N <= 512 and K <= 512:
        return pl.pallas_call(
            _fused_single_step_kernel,
            out_shape=jax.ShapeDtypeStruct((M, N), out_dtype),
            in_specs=[
                pl.BlockSpec(memory_space=pltpu.MemorySpace.VMEM),  # x
                pl.BlockSpec(memory_space=pltpu.MemorySpace.VMEM),  # w (N,K)
                pl.BlockSpec(memory_space=pltpu.MemorySpace.VMEM),  # b (1,N)
                pl.BlockSpec(memory_space=pltpu.MemorySpace.VMEM),  # other
            ],
            out_specs=pl.BlockSpec(memory_space=pltpu.MemorySpace.VMEM),
            cost_estimate=pl.CostEstimate(
                flops=2 * M * N * K,
                transcendentals=0,
                bytes_accessed=(M * K * in_itemsize + N * K * in_itemsize
                                + N * 4 + M * N * 4 + M * N * out_itemsize),
            ),
        )(x_c, w_c, b2, other)

    # ---------------- Generic tiled path ----------------
    # Pad only to the (8,128) granule; pick tiles as divisors of padded dims.
    Mp = _round_up(M, 8)
    Np = _round_up(N, 128)
    Kp = _round_up(K, 128)

    tm = _pick_tile(Mp, 8, tm)
    tn = _pick_tile(Np, 128, tn)
    tk = _pick_tile(Kp, 128, tk)

    # K must be zero-padded (zeros contribute nothing to the dot); M/N padding
    # is sliced off at the end.
    xp = x_c if (Mp == M and Kp == K) else jnp.pad(x_c, ((0, Mp - M), (0, Kp - K)))
    wp = w_c if (Np == N and Kp == K) else jnp.pad(w_c, ((0, Np - N), (0, Kp - K)))
    bp = b2 if Np == N else jnp.pad(b2, ((0, 0), (0, Np - N)))
    otherp = other if (Mp == M and Np == N) else jnp.pad(other, ((0, Mp - M), (0, Np - N)))

    gm, gn, gk = Mp // tm, Np // tn, Kp // tk

    # Rough double-buffered VMEM footprint -> scoped limit (capped for v7x 64 MiB).
    est_bytes = (2 * (tm * tk + tn * tk) * in_itemsize        # x / w blocks
                 + 2 * (tm * tn + tn) * 4                     # other / bias blocks
                 + 2 * tm * tn * out_itemsize                 # output blocks
                 + tm * tn * 4)                               # accumulator
    vmem_limit = min(max(est_bytes + (8 << 20), 32 << 20), 64 << 20)

    cost = pl.CostEstimate(
        flops=2 * Mp * Np * Kp,
        transcendentals=0,
        bytes_accessed=(gn * Mp * Kp * in_itemsize + gm * Np * Kp * in_itemsize
                        + Mp * Np * 4 + Np * 4 + Mp * Np * out_itemsize),
    )

    if gk == 1:
        # Single K step: no accumulator, no pl.when, direct write.
        out_padded = pl.pallas_call(
            _fused_single_step_kernel,
            out_shape=jax.ShapeDtypeStruct((Mp, Np), out_dtype),
            grid_spec=pltpu.PrefetchScalarGridSpec(
                num_scalar_prefetch=0,
                grid=(gm, gn),
                in_specs=[
                    pl.BlockSpec((tm, tk), lambda i, j: (i, 0)),   # x
                    pl.BlockSpec((tn, tk), lambda i, j: (j, 0)),   # w (N,K)
                    pl.BlockSpec((1, tn), lambda i, j: (0, j)),    # bias
                    pl.BlockSpec((tm, tn), lambda i, j: (i, j)),   # other
                ],
                out_specs=pl.BlockSpec((tm, tn), lambda i, j: (i, j)),
            ),
            compiler_params=pltpu.CompilerParams(
                dimension_semantics=("parallel", "parallel"),
                vmem_limit_bytes=vmem_limit,
            ),
            cost_estimate=cost,
        )(xp, wp, bp, otherp)
    else:
        out_padded = pl.pallas_call(
            _fused_multi_k_kernel,
            out_shape=jax.ShapeDtypeStruct((Mp, Np), out_dtype),
            grid_spec=pltpu.PrefetchScalarGridSpec(
                num_scalar_prefetch=0,
                grid=(gm, gn, gk),
                in_specs=[
                    pl.BlockSpec((tm, tk), lambda i, j, k: (i, k)),   # x
                    pl.BlockSpec((tn, tk), lambda i, j, k: (j, k)),   # w (N,K)
                    pl.BlockSpec((1, tn), lambda i, j, k: (0, j)),    # bias
                    pl.BlockSpec((tm, tn), lambda i, j, k: (i, j)),   # other
                ],
                out_specs=pl.BlockSpec((tm, tn), lambda i, j, k: (i, j)),
                scratch_shapes=[pltpu.VMEM((tm, tn), jnp.float32)],
            ),
            compiler_params=pltpu.CompilerParams(
                dimension_semantics=("parallel", "parallel", "arbitrary"),
                vmem_limit_bytes=vmem_limit,
            ),
            cost_estimate=cost,
        )(xp, wp, bp, otherp)

    if Mp == M and Np == N:
        return out_padded
    return out_padded[:M, :N]


if __name__ == "__main__":
    key = jax.random.PRNGKey(0)
    k_x, k_other, k_w, k_b = jax.random.split(key, 4)

    # Shapes implied by the module: x (10, 5), Linear(5, 10), other (10, 10).
    M, K, N = 10, 5, 10

    x = jax.random.normal(k_x, (M, K), dtype=jnp.float32)
    other = jax.random.normal(k_other, (M, N), dtype=jnp.float32)

    # Deterministic params mimicking nn.Linear's U(-1/sqrt(K), 1/sqrt(K)) init.
    bound = 1.0 / jnp.sqrt(jnp.float32(K))
    w = jax.random.uniform(k_w, (N, K), dtype=jnp.float32, minval=-bound, maxval=bound)
    b = jax.random.uniform(k_b, (N,), dtype=jnp.float32, minval=-bound, maxval=bound)

    out = jax.block_until_ready(linear_add_relu(x, w, b, other))
    ref = jnp.maximum(x @ w.T + b[None, :] + other, 0.0)
    assert out.shape == (M, N)
    assert jnp.allclose(out, ref, atol=1e-5, rtol=1e-5)

    # Sanity-check the generic tiled path (padding + multi-K accumulator) too.
    k2 = jax.random.split(key, 8)
    M2, K2, N2 = 300, 200, 260
    x2 = jax.random.normal(k2[4], (M2, K2), dtype=jnp.float32)
    other2 = jax.random.normal(k2[5], (M2, N2), dtype=jnp.float32)
    w2 = jax.random.normal(k2[6], (N2, K2), dtype=jnp.float32) * 0.05
    b2 = jax.random.normal(k2[7], (N2,), dtype=jnp.float32) * 0.05
    out2 = jax.block_until_ready(
        linear_add_relu(x2, w2, b2, other2, tm=128, tn=128, tk=128))
    ref2 = jnp.maximum(x2 @ w2.T + b2[None, :] + other2, 0.0)
    assert out2.shape == (M2, N2)
    assert jnp.allclose(out2, ref2, atol=1e-3, rtol=1e-3)

    print("KERNEL_OK")
</pallas_src>

<mosaic_0001>
module attributes {stable_mosaic.version = 11 : i64} {
  func.func @_fused_single_step_kernel(%arg0: memref<10x5xf32, #tpu.memory_space<vmem>>, %arg1: memref<10x5xf32, #tpu.memory_space<vmem>>, %arg2: memref<1x10xf32, #tpu.memory_space<vmem>>, %arg3: memref<10x10xf32, #tpu.memory_space<vmem>>, %arg4: memref<10x10xf32, #tpu.memory_space<vmem>>) attributes {dimension_semantics = [], scalar_prefetch = 0 : i64, scratch_operands = 0 : i64, tpu.core_type = #tpu.core_type<tc>} {
    %c0 = arith.constant 0 : index
    %c0_0 = arith.constant 0 : index
    %0 = vector.load %arg0[%c0, %c0_0] : memref<10x5xf32, #tpu.memory_space<vmem>>, vector<10x5xf32>
    %c0_1 = arith.constant 0 : index
    %c0_2 = arith.constant 0 : index
    %1 = vector.load %arg1[%c0_1, %c0_2] : memref<10x5xf32, #tpu.memory_space<vmem>>, vector<10x5xf32>
    %cst = arith.constant dense<0.000000e+00> : vector<10x10xf32>
    %2 = tpu.matmul %0, %1, %cst {dimension_numbers = #tpu.dot_dimension_numbers<[1], [1], [0], [0], [0, 0, 1, 0], [], []>} : vector<10x5xf32>, vector<10x5xf32>, vector<10x10xf32> -> vector<10x10xf32>
    %c0_3 = arith.constant 0 : index
    %c0_4 = arith.constant 0 : index
    %3 = vector.load %arg2[%c0_3, %c0_4] : memref<1x10xf32, #tpu.memory_space<vmem>>, vector<1x10xf32>
    %4 = vector.broadcast %3 : vector<1x10xf32> to vector<10x10xf32>
    %5 = arith.addf %2, %4 : vector<10x10xf32>
    %c0_5 = arith.constant 0 : index
    %c0_6 = arith.constant 0 : index
    %6 = vector.load %arg3[%c0_5, %c0_6] : memref<10x10xf32, #tpu.memory_space<vmem>>, vector<10x10xf32>
    %7 = arith.addf %5, %6 : vector<10x10xf32>
    %cst_7 = arith.constant 0.000000e+00 : f32
    %8 = vector.broadcast %cst_7 : f32 to vector<10x10xf32>
    %9 = arith.maximumf %7, %8 : vector<10x10xf32>
    %c0_8 = arith.constant 0 : index
    %c0_9 = arith.constant 0 : index
    %10 = vector.load %arg4[%c0_8, %c0_9] : memref<10x10xf32, #tpu.memory_space<vmem>>, vector<10x10xf32>
    tpu.vector_store %arg4[%c0_8, %c0_9], %9 {strides = array<i32>} : memref<10x10xf32, #tpu.memory_space<vmem>>, vector<10x10xf32>,
    return
  }
}

</mosaic_0001>

<bundles_post_ra>
// kernel: tpu_custom_call.1
= control target key start
LH: loop header
LB: loop body
LE: loop exit
PB: predicated region body
PF: predicated region fallthrough
CT: control target
= control target key end

     0   :  { %vm26_vm0 = vcmask 39936   ;;  %s178_s0 = inlined_call_operand.vmem [shape: f32[10,5], index: 0, kind: input, shape index: {}]   ;;  %s179_s1 = inlined_call_operand.vmem [shape: f32[10,5], index: 1, kind: input, shape index: {}]   ;;  %s180_s2 = inlined_call_operand.vmem [shape: f32[1,10], index: 2, kind: input, shape index: {}]   ;;  %s181_s3 = inlined_call_operand.vmem [shape: f32[10,10], index: 3, kind: input, shape index: {}]   ;;  %s182_s4 = inlined_call_operand.hbm [shape: f32[10,10], index: 4, kind: output, shape index: {}]  }
   0x1   :  { %v21_v0 = vld [vmem:[%s179_s1 + $0x8] sm:$0x3]  ;;  %v20_v1 = vld [vmem:[%s179_s1] sm:$0xff] }
   0x2   :  { %90 = vmatpush.xpose.msk.msra.mxu0 %vm26_vm0, %v21_v0  ;;  %94 = vmatpush.xpose.msk.msra.mxu1 %vm26_vm0, %v21_v0 }
   0x3   :  { %9 = vsyncpa [#allocation3], 0  ;;  %v18_v2 = vld [vmem:[%s178_s0] sm:$0xff]  ;;  %v19_v3 = vld [vmem:[%s178_s0 + $0x8] sm:$0x3]  ;;  %s126_s28 = smov [#allocation2]  }
   0x4   :  { %v99_v4 = vld [vmem:[%s180_s2] ss:$0 sm:$0xff]  ;;  %v63_v8 = vld [vmem:[%s181_s3 + $0x8] sm:$0x3]  ;;  %s76_s0 = sshll.u32 %s126_s28, 4  ;;  %s78_s5 = sshll.u32 %s182_s4, 4  ;;  %s77_s0 = int_to_ptr.vmem [resolvable:$true] %s76_s0  ;;  %s79_s5 = int_to_ptr.hbm [resolvable:$true] %s78_s5 }
   0x5   :  { %v62_v6 = vld [vmem:[%s181_s3] sm:$0xff]  ;;  %vm68_vm1 = vcmask 80896   ;;  %vm70_vm2 = vcmask 74752   ;;  %s127_s2 = smov 128   ;;  %s128_s3 = smov 8  }
   0x6   :  { %91 = vmatpush.xpose.msk.msra.mxu0 %vm26_vm0, %v20_v1  ;;  %95 = vmatpush.xpose.msk.msra.mxu1 %vm26_vm0, %v20_v1 }
   0x9   :  { %92 = vmatmul.msk.f32.vlgmr.msra.gmra.mxu0 %vm26_vm0, %v18_v2  ;;  %93 = vmatmul.msk.f32.vlgmr.msra.gmra.mxu1 %vm26_vm0, %v19_v3 }
  0x86   :  { %v56_v5 = vpop.f32.mrf.mxu0  ;;  %v59_v7 = vpop.f32.mrf.mxu1 }
  0x87   :  { %v57_v9 = vadd.f32 %v99_v4, %v56_v5  ;;  %v60_v10 = vadd.f32 %v99_v4, %v59_v7 }
  0x89   :  { %v64_v11 = vadd.f32 %v62_v6, %v57_v9  ;;  %v65_v12 = vadd.f32 %v63_v8, %v60_v10 }
  0x8b   :  { %v66_v13 = vmax.f32 %v64_v11, 0.0  ;;  %v67_v14 = vmax.f32 %v65_v12, 0.0 }
  0x8d   :  { %69 = vst.msk [vmem:[#allocation2] sm:$0xff] %vm68_vm1, %v66_v13 }
  0x8e   :  { %71 = vst.msk [vmem:[#allocation2 + $0x8] sm:$0x3] %vm70_vm2, %v67_v14 }
  0x8f   :  { %84 = dma.vmem_to_hbm [thread:$0]  %s77_s0, 256, %s79_s5, [#allocation3], %s127_s2, %s127_s2, %s128_s3  }
  0x90   :  { %124 = dma.done.wait [#allocation3], 256  }
  0x91   :  { %125 = vsyncadd [#allocation3], 4294967040 }
  0x92   :  { %89 = vsyncpa [#allocation3], 1 }

</bundles_post_ra>
